<compile_context>
chip_gen: v5e
topology: v5e:2x2
jax: 0.10.0
libtpu: 0.0.40
codegen_flags: <defaults>
</compile_context>

<pallas_src>
import jax
import jax.numpy as jnp
from jax.experimental import pallas as pl
from jax.experimental.pallas import tpu as pltpu


# ----------------------------- kernels ------------------------------------ #

def _actnorm_row_kernel(x_ref, p_ref, o_ref):
    # x_ref: (TR, TL) activations; p_ref: (TR, 2) with [:, 0]=loc, [:, 1]=scale.
    x = x_ref[...].astype(jnp.float32)
    loc = p_ref[:, 0:1]
    scale = p_ref[:, 1:2]
    o_ref[...] = (scale * (x + loc)).astype(o_ref.dtype)


def _actnorm_col_kernel(x_ref, p_ref, o_ref):
    # x_ref: (TR, TL) activations; p_ref: (2, TL) with [0]=loc, [1]=scale.
    x = x_ref[...].astype(jnp.float32)
    loc = p_ref[0:1, :]
    scale = p_ref[1:2, :]
    o_ref[...] = (scale * (x + loc)).astype(o_ref.dtype)


# --------------------------- tiling helpers -------------------------------- #

def _chip_config():
    """Generation-dependent tile caps / VMEM limit (safe fallback if unknown)."""
    kind = ""
    try:
        kind = jax.devices()[0].device_kind.lower()
    except Exception:
        pass
    if "v7" in kind or "7x" in kind:
        # 64 MiB physical VMEM, 3.2 TB/s HBM: big blocks to amortize step cost.
        # Worst case f32 working set: 2*(in+out)*8MiB = 32 MiB < 48 MiB limit.
        return dict(row_cap=1024, lane_cap=2048, vmem_limit=48 << 20, two_cores=True)
    if "v6" in kind:
        # 32 MiB scoped default: 512x2048 f32 blocks -> 16 MiB working set.
        return dict(row_cap=512, lane_cap=2048, vmem_limit=None, two_cores=False)
    # v5e / unknown: fits the 16 MiB scoped default (~8 MiB working set).
    return dict(row_cap=256, lane_cap=2048, vmem_limit=None, two_cores=False)


def _round_up(x, q):
    return ((x + q - 1) // q) * q


def _tile(dim, quantum, cap):
    """Tile along one axis.  Either the full dim (always layout-legal) or a
    quantum-multiple <= cap; the ragged tail is handled by the cdiv grid."""
    if dim <= cap:
        return dim
    return (cap // quantum) * quantum


# ----------------------------- wrapper ------------------------------------- #

def actnorm_forward(x, loc, scale, *, logdet=False):
    """ActNorm forward. x is NCHW, or (N, C) treated as (N, C, 1, 1)."""
    # TODO(synk): training-time data-dependent initialization (initialize()/
    # the `initialized` buffer) and reverse() are stateful and not implemented.
    squeeze = (x.ndim == 2)
    x4 = x[:, :, None, None] if squeeze else x
    N, C, H, W = x4.shape
    HW = H * W

    loc_c = loc.reshape(C).astype(jnp.float32)
    scale_c = scale.reshape(C).astype(jnp.float32)

    cfg = _chip_config()
    itemsize = jnp.dtype(x4.dtype).itemsize
    row_q = {4: 8, 2: 16, 1: 32}.get(itemsize, 8)

    if HW >= 128:
        # Layout A: rows = (n, c), lanes = spatial (free NCHW -> (N*C, HW) view).
        R, L = N * C, HW
        x2 = x4.reshape(R, L)
        params = jnp.stack([jnp.tile(loc_c, N), jnp.tile(scale_c, N)], axis=1)  # (R, 2)
        kernel = _actnorm_row_kernel

        def p_spec(tile_r, tile_l):
            return pl.BlockSpec((tile_r, 2), lambda i, j: (i, 0))
    else:
        # Layout B (small spatial / 2-D input): rows = batch, lanes = C*H*W,
        # so channels land on the lane axis -> lane-dense stores.
        R, L = N, C * HW
        x2 = x4.reshape(R, L)
        params = jnp.stack([jnp.repeat(loc_c, HW), jnp.repeat(scale_c, HW)], axis=0)  # (2, L)
        kernel = _actnorm_col_kernel

        def p_spec(tile_r, tile_l):
            return pl.BlockSpec((2, tile_l), lambda i, j: (0, j))

    tile_r = _tile(R, row_q, cfg["row_cap"])
    tile_l = _tile(L, 128, cfg["lane_cap"])

    # On 2-TC chips (v7x), split a degenerate (1,1) grid so both cores get work.
    if cfg["two_cores"] and pl.cdiv(R, tile_r) * pl.cdiv(L, tile_l) < 2:
        if tile_r >= 2 * row_q:
            tile_r = _round_up((tile_r + 1) // 2, row_q)
        elif tile_l >= 2 * 128:
            tile_l = _round_up((tile_l + 1) // 2, 128)

    grid = (pl.cdiv(R, tile_r), pl.cdiv(L, tile_l))

    total_bytes = R * L * itemsize
    cost = pl.CostEstimate(
        flops=2 * R * L,
        transcendentals=0,
        bytes_accessed=2 * total_bytes + int(params.size) * 4,
    )

    out2 = pl.pallas_call(
        kernel,
        out_shape=jax.ShapeDtypeStruct((R, L), x2.dtype),
        grid=grid,
        in_specs=[
            pl.BlockSpec((tile_r, tile_l), lambda i, j: (i, j)),
            p_spec(tile_r, tile_l),
        ],
        out_specs=pl.BlockSpec((tile_r, tile_l), lambda i, j: (i, j)),
        compiler_params=pltpu.CompilerParams(
            dimension_semantics=("parallel", "parallel"),
            vmem_limit_bytes=cfg["vmem_limit"],
        ),
        cost_estimate=cost,
    )(x2, params)

    h = out2.reshape(N, C, H, W)
    if squeeze:
        h = h[:, :, 0, 0]

    if logdet:
        # Tiny per-channel reduction; plain JAX glue (negligible cost).
        log_abs = jnp.log(jnp.abs(scale_c))
        ld = (H * W) * jnp.sum(log_abs) * jnp.ones((N,), dtype=jnp.float32)
        return h, ld
    return h


# ------------------------------ self-test ----------------------------------- #

if __name__ == "__main__":
    key = jax.random.PRNGKey(0)
    k_x, k_loc, k_scale = jax.random.split(key, 3)

    N, C, H, W = 2, 4, 16, 16
    x = jax.random.normal(k_x, (N, C, H, W), dtype=jnp.float32)

    # Parameters shaped (1, C, 1, 1) as in ActNorm.__init__; non-trivial values
    # so the kernel math is actually exercised.
    loc = jax.random.normal(k_loc, (1, C, 1, 1), dtype=jnp.float32)
    scale = 1.0 + 0.1 * jax.random.normal(k_scale, (1, C, 1, 1), dtype=jnp.float32)

    h, ld = actnorm_forward(x, loc, scale, logdet=True)
    h = jax.block_until_ready(h)
    ld = jax.block_until_ready(ld)

    # Reference (plain JAX, mirrors the PyTorch math)
    h_ref = scale * (x + loc)
    ld_ref = H * W * jnp.sum(jnp.log(jnp.abs(scale))) * jnp.ones((N,), jnp.float32)
    assert jnp.allclose(h, h_ref, atol=1e-5, rtol=1e-5), "elementwise mismatch"
    assert jnp.allclose(ld, ld_ref, atol=1e-5, rtol=1e-5), "logdet mismatch"

    # 2-D (N, C) input path (squeeze branch, channels on lanes).
    x2d = jax.random.normal(k_x, (N, C), dtype=jnp.float32)
    h2 = jax.block_until_ready(actnorm_forward(x2d, loc, scale))
    h2_ref = (scale * (x2d[:, :, None, None] + loc))[:, :, 0, 0]
    assert jnp.allclose(h2, h2_ref, atol=1e-5, rtol=1e-5), "2D-path mismatch"

    # Non-128-aligned spatial dim larger than the lane tile: exercises the
    # cdiv grid with a ragged (padded/masked) last lane block.
    Cr = 2
    xr = jax.random.normal(k_x, (1, Cr, 50, 50), dtype=jnp.float32)
    locr = jax.random.normal(k_loc, (1, Cr, 1, 1), dtype=jnp.float32)
    scaler = 1.0 + 0.1 * jax.random.normal(k_scale, (1, Cr, 1, 1), dtype=jnp.float32)
    hr = jax.block_until_ready(actnorm_forward(xr, locr, scaler))
    hr_ref = scaler * (xr + locr)
    assert jnp.allclose(hr, hr_ref, atol=1e-5, rtol=1e-5), "ragged-path mismatch"

    print("KERNEL_OK")
</pallas_src>

<mosaic_0001>
module attributes {stable_mosaic.version = 11 : i64} {
  func.func @_actnorm_row_kernel(%arg0: i32, %arg1: i32, %arg2: memref<8x256xf32, #tpu.memory_space<vmem>>, %arg3: memref<8x2xf32, #tpu.memory_space<vmem>>, %arg4: memref<8x256xf32, #tpu.memory_space<vmem>>) attributes {dimension_semantics = [#tpu.dimension_semantics<parallel>, #tpu.dimension_semantics<parallel>], iteration_bounds = array<i64: 1, 1>, scalar_prefetch = 0 : i64, scratch_operands = 0 : i64, tpu.core_type = #tpu.core_type<tc>, window_params = [{transform_indices = @transform_0, window_bounds = array<i64: 8, 256>}, {transform_indices = @transform_1, window_bounds = array<i64: 8, 2>}, {transform_indices = @transform_2, window_bounds = array<i64: 8, 256>}]} {
    %c0 = arith.constant 0 : index
    %c0_0 = arith.constant 0 : index
    %0 = vector.load %arg2[%c0, %c0_0] : memref<8x256xf32, #tpu.memory_space<vmem>>, vector<8x256xf32>
    %c0_1 = arith.constant 0 : index
    %c0_2 = arith.constant 0 : index
    %1 = vector.load %arg3[%c0_1, %c0_2] : memref<8x2xf32, #tpu.memory_space<vmem>>, vector<8x1xf32>
    %c0_3 = arith.constant 0 : index
    %c1 = arith.constant 1 : index
    %2 = vector.load %arg3[%c0_3, %c1] : memref<8x2xf32, #tpu.memory_space<vmem>>, vector<8x1xf32>
    %3 = vector.broadcast %1 : vector<8x1xf32> to vector<8x256xf32>
    %4 = arith.addf %0, %3 : vector<8x256xf32>
    %5 = vector.broadcast %2 : vector<8x1xf32> to vector<8x256xf32>
    %6 = arith.mulf %5, %4 : vector<8x256xf32>
    %c0_4 = arith.constant 0 : index
    %c0_5 = arith.constant 0 : index
    %7 = vector.load %arg4[%c0_4, %c0_5] : memref<8x256xf32, #tpu.memory_space<vmem>>, vector<8x256xf32>
    tpu.vector_store %arg4[%c0_4, %c0_5], %6 {strides = array<i32>} : memref<8x256xf32, #tpu.memory_space<vmem>>, vector<8x256xf32>,
    return
  }
  func.func @transform_0(%arg0: i32, %arg1: i32) -> (i32, i32) {
    %c0_i32 = arith.constant 0 : i32
    return %arg0, %arg1 : i32, i32
  }
  func.func @transform_1(%arg0: i32, %arg1: i32) -> (i32, i32) {
    %c0_i32 = arith.constant 0 : i32
    %c0_i32_0 = arith.constant 0 : i32
    return %arg0, %c0_i32 : i32, i32
  }
  func.func @transform_2(%arg0: i32, %arg1: i32) -> (i32, i32) {
    %c0_i32 = arith.constant 0 : i32
    return %arg0, %arg1 : i32, i32
  }
}

</mosaic_0001>

<bundles_post_ra>
// kernel: tpu_custom_call.1
= control target key start
LH: loop header
LB: loop body
LE: loop exit
PB: predicated region body
PF: predicated region fallthrough
CT: control target
= control target key end

     0   :  { %7 = vsyncpa [#allocation3], 0  ;;  %s147_s0 = inlined_call_operand.hbm [shape: f32[8,256], index: 0, kind: input, shape index: {}]   ;;  %s148_s1 = inlined_call_operand.vmem [shape: f32[8,2], index: 1, kind: input, shape index: {}]   ;;  %s149_s2 = inlined_call_operand.hbm [shape: f32[8,256], index: 2, kind: output, shape index: {}]  }
   0x1   :  { %8 = vsyncpa [#allocation4], 0  ;;  %s14_s11 = sshll.u32 %s147_s0, 4  ;;  %s119_s12 = smov [#allocation2]   ;;  %s15_s11 = int_to_ptr.hbm [resolvable:$true] %s14_s11 }
   0x2   :  { %s16_s13 = sshll.u32 %s119_s12, 4  ;;  %s17_s13 = int_to_ptr.vmem [resolvable:$true] %s16_s13 }
   0x3   :  { %19 = dma.hbm_to_vmem [thread:$0]  %s15_s11, 256, %s17_s13, [#allocation3]  }
   0x4   :  { %115 = dma.done.wait [#allocation3], 256  }
   0x5   :  { %116 = vsyncadd [#allocation3], 4294967040  ;;  %v120_v0 = vmov 0   ;;  %v28_v1 = vld [vmem:[%s148_s1] sm:$0xff]  ;;  %v121_v2 = vmov 1   ;;  %v27_v5 = vld [vmem:[#allocation2 + $0x8] sm:$0xff] }
   0x6   :  { %65 = vset.pattern.permute.xlu0 %v120_v0  ;;  %v26_v4 = vld [vmem:[#allocation2] sm:$0xff]  ;;  %s122_s0 = smov [#allocation5]   ;;  %s51_s19 = sshll.u32 %s149_s2, 4  ;;  %s52_s19 = int_to_ptr.hbm [resolvable:$true] %s51_s19 }
   0x7   :  { %31 = vperm.xlu0 %65, %v28_v1   ;;  %s49_s16 = sshll.u32 %s122_s0, 4  ;;  %s50_s16 = int_to_ptr.vmem [resolvable:$true] %s49_s16 }
   0xf   :  { %66 = vset.pattern.permute.xlu0 %v121_v2 }
  0x10   :  { %37 = vperm.xlu0 %66, %v28_v1  }
  0x79   :  { %v32_v3 = vpop.permute.xlu0 %31 }
  0x7a   :  { %v34_v6 = vadd.f32 %v32_v3, %v26_v4  ;;  %v35_v7 = vadd.f32 %v32_v3, %v27_v5 }
  0x82   :  { %v38_v8 = vpop.permute.xlu0 %37 }
  0x83   :  { %v40_v9 = vmul.f32 %v38_v8, %v34_v6  ;;  %v41_v10 = vmul.f32 %v38_v8, %v35_v7 }
  0x85   :  { %42 = vst [vmem:[#allocation5] sm:$0xff] %v40_v9 }
  0x86   :  { %43 = vst [vmem:[#allocation5 + $0x8] sm:$0xff] %v41_v10 }
  0x87   :  { %54 = dma.vmem_to_hbm [thread:$0]  %s50_s16, 256, %s52_s19, [#allocation4]  }
  0x88   :  { %117 = dma.done.wait [#allocation4], 256  }
  0x89   :  { %118 = vsyncadd [#allocation4], 4294967040 }
  0x8a   :  { %59 = vsyncpa [#allocation3], 1 }
  0x8b   :  { %60 = vsyncpa [#allocation4], 1 }

</bundles_post_ra>
